<compile_context>
chip_gen: v6e
topology: v6e:2x2x1
jax: 0.10.0
libtpu: 0.0.40
codegen_flags: <defaults>
</compile_context>

<pallas_src>
import math
from functools import partial

import jax
import jax.numpy as jnp
from jax import lax
from jax.experimental import pallas as pl
from jax.experimental.pallas import tpu as pltpu

_M_INIT = -1e30  # finite floor for the running max (avoids -inf - -inf = nan)


def _pos_align_kernel(feat_i_ref, feat_j_ref, inv_i_ref, inv_j_ref,
                      tgt_col_ref, tgt_row_ref, lse_ref, m_scr, l_scr):
    """One (row-block i, col-block j) step of the tiled masked logsumexp."""
    j = pl.program_id(1)

    @pl.when(j == 0)
    def _():
        m_scr[...] = jnp.full(m_scr.shape, _M_INIT, dtype=jnp.float32)
        l_scr[...] = jnp.zeros(l_scr.shape, dtype=jnp.float32)

    # label[a, b] = (target[row a] == target[col b]).  Padded entries carry a
    # sentinel label that never matches a real one, so no extra validity mask.
    label = tgt_col_ref[...] == tgt_row_ref[...]                     # (bm, bn)

    # Skip tiles with no positive pair: the online-lse state would be
    # unchanged (all -inf), so both the MXU matmul and the bm*bn exp can be
    # skipped.  Cost when not skipped: one select + reduce + branch.
    has_pos = jnp.max(jnp.where(label, jnp.float32(1.0), jnp.float32(0.0))) > 0.0

    @pl.when(has_pos)
    def _():
        # "NT" matmul: contract the LAST dim of both tiles -> no transpose is
        # materialized; operands keep the input dtype, accumulation is f32.
        sim = lax.dot_general(
            feat_i_ref[...], feat_j_ref[...],
            dimension_numbers=(((1,), (1,)), ((), ())),
            preferred_element_type=jnp.float32)                      # (bm, bn)

        # Post-matmul scaling by the precomputed f32 inverse norms, folded
        # into the mask select.  exp(-inf) == 0, so the masked tile feeds the
        # exp-sum directly (no second select).
        masked = jnp.where(label,
                           sim * inv_i_ref[...] * inv_j_ref[...],
                           -jnp.inf)                                 # (bm, bn)

        # Flash-style online logsumexp along the lane (last) axis.
        m_prev = m_scr[...]                                          # (bm, 1)
        m_new = jnp.maximum(m_prev, jnp.max(masked, axis=1, keepdims=True))
        alpha = jnp.exp(m_prev - m_new)
        l_scr[...] = alpha * l_scr[...] + jnp.sum(jnp.exp(masked - m_new),
                                                  axis=1, keepdims=True)
        m_scr[...] = m_new

    @pl.when(j == pl.num_programs(1) - 1)
    def _():
        lse_ref[...] = m_scr[...] + jnp.log(l_scr[...])


def _round_up(x, m):
    return ((x + m - 1) // m) * m


def _vmem_bytes_estimate(bm, bn, d, itemsize):
    """Rough per-step VMEM footprint: double-buffered feature tiles plus the
    f32 sim / label / mask / exp chain and the small per-row tensors."""
    feat = 2 * (bm + bn) * d * itemsize          # double-buffered feature tiles
    simchain = 6 * bm * bn * 4                   # sim, masked, exp, label, ...
    small = 8 * (bm + bn) * 4                    # inv norms, targets, lse, scratch
    return feat + simchain + small


def _vmem_budget_bytes():
    """Generation-aware VMEM budget (v5e/v6e: 128 MiB, v7x: 64 MiB per TC),
    leaving ~25% headroom for the compiler."""
    try:
        cap = int(pltpu.get_tpu_info().vmem_capacity_bytes)
    except Exception:
        cap = 64 * 1024 * 1024                   # conservative fallback (v7x)
    return (3 * cap) // 4


@partial(jax.jit, static_argnames=("block_m", "block_n"))
def pos_align(feature, target, *, block_m=None, block_n=None):
    """PosAlign forward: softplus(logsumexp(cosine-sim over same-label pairs))."""
    N, D = feature.shape
    itemsize = jnp.dtype(feature.dtype).itemsize
    # Sublane tile for the feature dtype: 8 (f32) / 16 (bf16) / 32 (int8/fp8).
    sub = max(8, 32 // max(itemsize, 1))

    budget = _vmem_budget_bytes()
    if block_m is None or block_n is None:
        if N <= 512:
            block_m = block_n = _round_up(N, sub)     # single tile, grid (1, 1)
        else:
            # Column tiles are re-read from HBM once per row block, so make the
            # row block as large as the VMEM budget allows
            # (HBM read traffic ~ (1 + N/bm) * N * D * itemsize).
            block_m = 1024 if block_m is None else block_m
            block_n = 512 if block_n is None else block_n
            while block_m > 256 and _vmem_bytes_estimate(
                    block_m, block_n, D, itemsize) > budget:
                block_m //= 2
            while block_n > 256 and _vmem_bytes_estimate(
                    block_m, block_n, D, itemsize) > budget:
                block_n //= 2
            # Megacore (v7x, 2 TCs): keep >= 2 row blocks so the "parallel"
            # grid axis can split across cores.
            while block_m > 256 and _round_up(N, block_m) // block_m < 2:
                block_m //= 2
    bm, bn = block_m, block_n

    n_pad = _round_up(N, bm * bn // math.gcd(bm, bn))
    if bm < n_pad:
        assert bm % sub == 0, f"row block ({bm}) must be a multiple of {sub}"
    if bn < n_pad:
        assert bn % 128 == 0 and bn % sub == 0, \
            f"col block ({bn}) must be a multiple of 128 (and of {sub})"

    # Precompute f32 inverse L2 norms once (one cheap O(N*D) XLA pass); the
    # kernel scales the sim tile after the matmul (matches F.normalize eps).
    f32 = feature.astype(jnp.float32)
    inv = lax.rsqrt(jnp.maximum(jnp.sum(f32 * f32, axis=1), jnp.float32(1e-24)))

    # Keep the original dtype for the matmul operands (bf16 stays bf16 across
    # the HBM->VMEM DMA and into the MXU); zero-pad the extra rows.
    feat_p = jnp.pad(feature, ((0, n_pad - N), (0, 0)))
    tgt32 = target.astype(jnp.int32)
    if n_pad > N:
        # Sentinel label that can never equal a real one (min(label) - 1, with
        # a wrap-around guard) -> padded columns are excluded by the label
        # mask itself; padded rows are discarded by the [:N] epilogue slice.
        mn = jnp.min(tgt32)
        sentinel = jnp.where(mn == jnp.iinfo(jnp.int32).min,
                             jnp.iinfo(jnp.int32).max,
                             mn - 1).astype(jnp.int32)
        tgt_p = jnp.concatenate(
            [tgt32, jnp.full((n_pad - N,), sentinel, dtype=jnp.int32)])
        inv_p = jnp.concatenate(
            [inv, jnp.ones((n_pad - N,), dtype=jnp.float32)])
    else:
        tgt_p, inv_p = tgt32, inv

    tgt_col = tgt_p.reshape(n_pad, 1)
    tgt_row = tgt_p.reshape(1, n_pad)
    inv_col = inv_p.reshape(n_pad, 1)
    inv_row = inv_p.reshape(1, n_pad)

    grid = (n_pad // bm, n_pad // bn)
    row_lse = pl.pallas_call(
        _pos_align_kernel,
        out_shape=jax.ShapeDtypeStruct((n_pad, 1), jnp.float32),
        grid_spec=pltpu.PrefetchScalarGridSpec(
            num_scalar_prefetch=0,
            grid=grid,
            in_specs=[
                pl.BlockSpec((bm, D), lambda i, j: (i, 0)),   # feature rows
                pl.BlockSpec((bn, D), lambda i, j: (j, 0)),   # feature cols
                pl.BlockSpec((bm, 1), lambda i, j: (i, 0)),   # 1/||f|| (rows)
                pl.BlockSpec((1, bn), lambda i, j: (0, j)),   # 1/||f|| (cols)
                pl.BlockSpec((bm, 1), lambda i, j: (i, 0)),   # target (rows)
                pl.BlockSpec((1, bn), lambda i, j: (0, j)),   # target (cols)
            ],
            out_specs=pl.BlockSpec((bm, 1), lambda i, j: (i, 0)),
            scratch_shapes=[pltpu.VMEM((bm, 1), jnp.float32),    # running max
                            pltpu.VMEM((bm, 1), jnp.float32)],   # running sum
        ),
        compiler_params=pltpu.CompilerParams(
            # Row blocks are independent -> megacore-parallel (2 TCs on v7x);
            # the col axis is the resident-accumulator reduction.
            dimension_semantics=("parallel", "arbitrary"),
            vmem_limit_bytes=int(budget),
        ),
    )(feat_p, feat_p, inv_col, inv_row, tgt_col, tgt_row)

    # Tiny epilogue in plain XLA: combine per-row lse across rows, softplus.
    lse = jax.nn.logsumexp(row_lse[:N, 0])
    return jax.nn.softplus(lse)


def _reference(feature, target):
    # Pure-JAX reference (matches the PyTorch module).
    f = feature.astype(jnp.float32)
    f = f / jnp.maximum(jnp.linalg.norm(f, axis=1, keepdims=True), 1e-12)
    sim = f @ f.T
    label = target[:, None] == target[None, :]
    lse = jax.nn.logsumexp(jnp.where(label, sim, -jnp.inf))
    return jax.nn.softplus(lse)


if __name__ == "__main__":
    key = jax.random.PRNGKey(0)
    k1, k2, k3, k4, k5, k6 = jax.random.split(key, 6)

    # 1) Spec-sized toy problem (seq=8, hidden=32): single-block (1, 1) grid.
    feat_a = jax.random.normal(k1, (8, 32), dtype=jnp.float32)
    tgt_a = jax.random.randint(k2, (8,), 0, 4, dtype=jnp.int32)
    loss_a = pos_align(feat_a, tgt_a)
    jax.block_until_ready(loss_a)
    ref_a = _reference(feat_a, tgt_a)
    assert jnp.allclose(loss_a, ref_a, rtol=1e-4, atol=1e-4), (loss_a, ref_a)

    # 2) Non-aligned shape: exercises row/column padding + the sentinel label.
    feat_b = jax.random.normal(k3, (10, 24), dtype=jnp.float32)
    tgt_b = jax.random.randint(k4, (10,), 0, 3, dtype=jnp.int32)
    loss_b = pos_align(feat_b, tgt_b)
    jax.block_until_ready(loss_b)
    ref_b = _reference(feat_b, tgt_b)
    assert jnp.allclose(loss_b, ref_b, rtol=1e-4, atol=1e-4), (loss_b, ref_b)

    # 3) Forced 128x128 tiles: exercises the multi-block online-logsumexp path,
    #    the sentinel padding and the positive-tile skip (300 rows -> grid 3x3).
    feat_c = jax.random.normal(k5, (300, 48), dtype=jnp.float32)
    tgt_c = jax.random.randint(k6, (300,), 0, 4, dtype=jnp.int32)
    loss_c = pos_align(feat_c, tgt_c, block_m=128, block_n=128)
    jax.block_until_ready(loss_c)
    ref_c = _reference(feat_c, tgt_c)
    assert jnp.allclose(loss_c, ref_c, rtol=5e-3, atol=5e-3), (loss_c, ref_c)

    print("KERNEL_OK")
</pallas_src>

<mosaic_0001>
module attributes {stable_mosaic.version = 11 : i64} {
  func.func @_pos_align_kernel(%arg0: i32, %arg1: i32, %arg2: memref<8x32xf32, #tpu.memory_space<vmem>>, %arg3: memref<8x32xf32, #tpu.memory_space<vmem>>, %arg4: memref<8x1xf32, #tpu.memory_space<vmem>>, %arg5: memref<1x8xf32, #tpu.memory_space<vmem>>, %arg6: memref<8x1xi32, #tpu.memory_space<vmem>>, %arg7: memref<1x8xi32, #tpu.memory_space<vmem>>, %arg8: memref<8x1xf32, #tpu.memory_space<vmem>>, %arg9: memref<8x1xf32, #tpu.memory_space<vmem>>, %arg10: memref<8x1xf32, #tpu.memory_space<vmem>>) attributes {dimension_semantics = [#tpu.dimension_semantics<parallel>, #tpu.dimension_semantics<arbitrary>], iteration_bounds = array<i64: 1, 1>, scalar_prefetch = 0 : i64, scratch_operands = 2 : i64, tpu.core_type = #tpu.core_type<tc>, window_params = [{transform_indices = @transform_0, window_bounds = array<i64: 8, 32>}, {transform_indices = @transform_1, window_bounds = array<i64: 8, 32>}, {transform_indices = @transform_2, window_bounds = array<i64: 8, 1>}, {transform_indices = @transform_3, window_bounds = array<i64: 1, 8>}, {transform_indices = @transform_4, window_bounds = array<i64: 8, 1>}, {transform_indices = @transform_5, window_bounds = array<i64: 1, 8>}, {transform_indices = @transform_6, window_bounds = array<i64: 8, 1>}]} {
    %c0_i32 = arith.constant 0 : i32
    %0 = arith.cmpi eq, %arg1, %c0_i32 : i32
    %1 = arith.extui %0 : i1 to i32
    %c0_i32_0 = arith.constant 0 : i32
    %2 = arith.cmpi ne, %1, %c0_i32_0 : i32
    scf.if %2 {
      %cst_10 = arith.constant -1.000000e+30 : f32
      %21 = vector.broadcast %cst_10 : f32 to vector<8x1xf32>
      %c0_11 = arith.constant 0 : index
      %c0_12 = arith.constant 0 : index
      %22 = vector.load %arg9[%c0_11, %c0_12] : memref<8x1xf32, #tpu.memory_space<vmem>>, vector<8x1xf32>
      tpu.vector_store %arg9[%c0_11, %c0_12], %21 {strides = array<i32>} : memref<8x1xf32, #tpu.memory_space<vmem>>, vector<8x1xf32>,
      %cst_13 = arith.constant 0.000000e+00 : f32
      %23 = vector.broadcast %cst_13 : f32 to vector<8x1xf32>
      %c0_14 = arith.constant 0 : index
      %c0_15 = arith.constant 0 : index
      %24 = vector.load %arg10[%c0_14, %c0_15] : memref<8x1xf32, #tpu.memory_space<vmem>>, vector<8x1xf32>
      tpu.vector_store %arg10[%c0_14, %c0_15], %23 {strides = array<i32>} : memref<8x1xf32, #tpu.memory_space<vmem>>, vector<8x1xf32>,
    } else {
    }
    %c0 = arith.constant 0 : index
    %c0_1 = arith.constant 0 : index
    %3 = vector.load %arg6[%c0, %c0_1] : memref<8x1xi32, #tpu.memory_space<vmem>>, vector<8x1xi32>
    %c0_2 = arith.constant 0 : index
    %c0_3 = arith.constant 0 : index
    %4 = vector.load %arg7[%c0_2, %c0_3] : memref<1x8xi32, #tpu.memory_space<vmem>>, vector<1x8xi32>
    %5 = vector.broadcast %3 : vector<8x1xi32> to vector<8x8xi32>
    %6 = vector.broadcast %4 : vector<1x8xi32> to vector<8x8xi32>
    %7 = arith.cmpi eq, %5, %6 : vector<8x8xi32>
    %cst = arith.constant 1.000000e+00 : f32
    %cst_4 = arith.constant 0.000000e+00 : f32
    %8 = vector.broadcast %cst : f32 to vector<8x8xf32>
    %9 = vector.broadcast %cst_4 : f32 to vector<8x8xf32>
    %10 = arith.select %7, %8, %9 : vector<8x8xi1>, vector<8x8xf32>
    %11 = vector.shape_cast %10 : vector<8x8xf32> to vector<1x8x8xf32>
    %cst_5 = arith.constant dense<0xFF800000> : vector<1xf32>
    %12 = vector.multi_reduction <maximumf>, %11, %cst_5 [1, 2] : vector<1x8x8xf32> to vector<1xf32>
    %13 = vector.shape_cast %12 : vector<1xf32> to vector<1x1x1xf32>
    %14 = vector.extract %13[0, 0, 0] : f32 from vector<1x1x1xf32>
    %cst_6 = arith.constant 0.000000e+00 : f32
    %15 = arith.cmpf ogt, %14, %cst_6 : f32
    %16 = arith.extui %15 : i1 to i32
    %c0_i32_7 = arith.constant 0 : i32
    %17 = arith.cmpi ne, %16, %c0_i32_7 : i32
    scf.if %17 {
      %c0_10 = arith.constant 0 : index
      %c0_11 = arith.constant 0 : index
      %21 = vector.load %arg2[%c0_10, %c0_11] : memref<8x32xf32, #tpu.memory_space<vmem>>, vector<8x32xf32>
      %c0_12 = arith.constant 0 : index
      %c0_13 = arith.constant 0 : index
      %22 = vector.load %arg3[%c0_12, %c0_13] : memref<8x32xf32, #tpu.memory_space<vmem>>, vector<8x32xf32>
      %cst_14 = arith.constant dense<0.000000e+00> : vector<8x8xf32>
      %23 = tpu.matmul %21, %22, %cst_14 {dimension_numbers = #tpu.dot_dimension_numbers<[1], [1], [0], [0], [0, 0, 1, 0], [], []>} : vector<8x32xf32>, vector<8x32xf32>, vector<8x8xf32> -> vector<8x8xf32>
      %c0_15 = arith.constant 0 : index
      %c0_16 = arith.constant 0 : index
      %24 = vector.load %arg4[%c0_15, %c0_16] : memref<8x1xf32, #tpu.memory_space<vmem>>, vector<8x1xf32>
      %25 = vector.broadcast %24 : vector<8x1xf32> to vector<8x8xf32>
      %26 = arith.mulf %23, %25 : vector<8x8xf32>
      %c0_17 = arith.constant 0 : index
      %c0_18 = arith.constant 0 : index
      %27 = vector.load %arg5[%c0_17, %c0_18] : memref<1x8xf32, #tpu.memory_space<vmem>>, vector<1x8xf32>
      %28 = vector.broadcast %27 : vector<1x8xf32> to vector<8x8xf32>
      %29 = arith.mulf %26, %28 : vector<8x8xf32>
      %cst_19 = arith.constant 0xFF800000 : f32
      %30 = vector.broadcast %cst_19 : f32 to vector<8x8xf32>
      %31 = arith.select %7, %29, %30 : vector<8x8xi1>, vector<8x8xf32>
      %c0_20 = arith.constant 0 : index
      %c0_21 = arith.constant 0 : index
      %32 = vector.load %arg9[%c0_20, %c0_21] : memref<8x1xf32, #tpu.memory_space<vmem>>, vector<8x1xf32>
      %cst_22 = arith.constant dense<0xFF800000> : vector<8xf32>
      %33 = vector.multi_reduction <maximumf>, %31, %cst_22 [1] : vector<8x8xf32> to vector<8xf32>
      %34 = vector.shape_cast %33 : vector<8xf32> to vector<8x1xf32>
      %35 = arith.maximumf %32, %34 : vector<8x1xf32>
      %36 = arith.subf %32, %35 : vector<8x1xf32>
      %37 = math.exp %36 : vector<8x1xf32>
      %c0_23 = arith.constant 0 : index
      %c0_24 = arith.constant 0 : index
      %38 = vector.load %arg10[%c0_23, %c0_24] : memref<8x1xf32, #tpu.memory_space<vmem>>, vector<8x1xf32>
      %39 = arith.mulf %37, %38 : vector<8x1xf32>
      %40 = vector.broadcast %35 : vector<8x1xf32> to vector<8x8xf32>
      %41 = arith.subf %31, %40 : vector<8x8xf32>
      %42 = math.exp %41 : vector<8x8xf32>
      %cst_25 = arith.constant dense<0.000000e+00> : vector<8xf32>
      %43 = vector.multi_reduction <add>, %42, %cst_25 [1] : vector<8x8xf32> to vector<8xf32>
      %44 = vector.shape_cast %43 : vector<8xf32> to vector<8x1xf32>
      %45 = arith.addf %39, %44 : vector<8x1xf32>
      %c0_26 = arith.constant 0 : index
      %c0_27 = arith.constant 0 : index
      %46 = vector.load %arg10[%c0_26, %c0_27] : memref<8x1xf32, #tpu.memory_space<vmem>>, vector<8x1xf32>
      tpu.vector_store %arg10[%c0_26, %c0_27], %45 {strides = array<i32>} : memref<8x1xf32, #tpu.memory_space<vmem>>, vector<8x1xf32>,
      %c0_28 = arith.constant 0 : index
      %c0_29 = arith.constant 0 : index
      %47 = vector.load %arg9[%c0_28, %c0_29] : memref<8x1xf32, #tpu.memory_space<vmem>>, vector<8x1xf32>
      tpu.vector_store %arg9[%c0_28, %c0_29], %35 {strides = array<i32>} : memref<8x1xf32, #tpu.memory_space<vmem>>, vector<8x1xf32>,
    } else {
    }
    %c0_i32_8 = arith.constant 0 : i32
    %18 = arith.cmpi eq, %arg1, %c0_i32_8 : i32
    %19 = arith.extui %18 : i1 to i32
    %c0_i32_9 = arith.constant 0 : i32
    %20 = arith.cmpi ne, %19, %c0_i32_9 : i32
    scf.if %20 {
      %c0_10 = arith.constant 0 : index
      %c0_11 = arith.constant 0 : index
      %21 = vector.load %arg9[%c0_10, %c0_11] : memref<8x1xf32, #tpu.memory_space<vmem>>, vector<8x1xf32>
      %c0_12 = arith.constant 0 : index
      %c0_13 = arith.constant 0 : index
      %22 = vector.load %arg10[%c0_12, %c0_13] : memref<8x1xf32, #tpu.memory_space<vmem>>, vector<8x1xf32>
      %23 = math.log %22 : vector<8x1xf32>
      %24 = arith.addf %21, %23 : vector<8x1xf32>
      %c0_14 = arith.constant 0 : index
      %c0_15 = arith.constant 0 : index
      %25 = vector.load %arg8[%c0_14, %c0_15] : memref<8x1xf32, #tpu.memory_space<vmem>>, vector<8x1xf32>
      tpu.vector_store %arg8[%c0_14, %c0_15], %24 {strides = array<i32>} : memref<8x1xf32, #tpu.memory_space<vmem>>, vector<8x1xf32>,
    } else {
    }
    return
  }
  func.func @transform_0(%arg0: i32, %arg1: i32) -> (i32, i32) {
    %c0_i32 = arith.constant 0 : i32
    %c0_i32_0 = arith.constant 0 : i32
    return %arg0, %c0_i32 : i32, i32
  }
  func.func @transform_1(%arg0: i32, %arg1: i32) -> (i32, i32) {
    %c0_i32 = arith.constant 0 : i32
    %c0_i32_0 = arith.constant 0 : i32
    return %arg1, %c0_i32 : i32, i32
  }
  func.func @transform_2(%arg0: i32, %arg1: i32) -> (i32, i32) {
    %c0_i32 = arith.constant 0 : i32
    %c0_i32_0 = arith.constant 0 : i32
    return %arg0, %c0_i32 : i32, i32
  }
  func.func @transform_3(%arg0: i32, %arg1: i32) -> (i32, i32) {
    %c0_i32 = arith.constant 0 : i32
    %c0_i32_0 = arith.constant 0 : i32
    return %c0_i32, %arg1 : i32, i32
  }
  func.func @transform_4(%arg0: i32, %arg1: i32) -> (i32, i32) {
    %c0_i32 = arith.constant 0 : i32
    %c0_i32_0 = arith.constant 0 : i32
    return %arg0, %c0_i32 : i32, i32
  }
  func.func @transform_5(%arg0: i32, %arg1: i32) -> (i32, i32) {
    %c0_i32 = arith.constant 0 : i32
    %c0_i32_0 = arith.constant 0 : i32
    return %c0_i32, %arg1 : i32, i32
  }
  func.func @transform_6(%arg0: i32, %arg1: i32) -> (i32, i32) {
    %c0_i32 = arith.constant 0 : i32
    %c0_i32_0 = arith.constant 0 : i32
    return %arg0, %c0_i32 : i32, i32
  }
}

</mosaic_0001>

<bundles_post_ra>
// kernel: pos_align.1
= control target key start
LH: loop header
LB: loop body
LE: loop exit
PB: predicated region body
PF: predicated region fallthrough
CT: control target
= control target key end

     0   :  { %vm27_vm0 = vcmask 7168   ;;  %v218_v0 = vmov 0   ;;  %v219_v2 = vmov -1e+30   ;;  %v220_v3 = vmov 0.0   ;;  %s290_s4 = inlined_call_operand.vmem [shape: s32[8,1], index: 4, kind: input, shape index: {}]   ;;  %s291_s5 = inlined_call_operand.vmem [shape: s32[1,8], index: 5, kind: input, shape index: {}]   ;;  %s292_s0 = inlined_call_operand.vmem [shape: f32[8,32], index: 0, kind: input, shape index: {}, may-alias: {0,1}]   ;;  %s293_s1 = inlined_call_operand.vmem [shape: f32[8,32], index: 1, kind: input, shape index: {}, may-alias: {0,1}]   ;;  %s294_s2 = inlined_call_operand.vmem [shape: f32[8,1], index: 2, kind: input, shape index: {}]   ;;  %s295_s3 = inlined_call_operand.vmem [shape: f32[1,8], index: 3, kind: input, shape index: {}]   ;;  %s296_s6 = inlined_call_operand.vmem [shape: f32[8,1], index: 6, kind: output, shape index: {}]  }
   0x1   :  { %209 = vset.pattern.permute.xlu0 %v218_v0  ;;  %v30_v1 = vld [vmem:[%s290_s4] sm:$0xff]  ;;  %28 = vst.msk [vmem:[#allocation2] sm:$0xff] %vm27_vm0, %v219_v2  ;;  %29 = vst.msk [vmem:[#allocation3] sm:$0xff] %vm27_vm0, %v220_v3  ;;  %vm41_vm1 = vcmask 64512  }
   0x2   :  { %33 = vperm.xlu0 %209, %v30_v1   ;;  %v190_v4 = vld [vmem:[%s291_s5] ss:$0 sm:$0xff] }
  0x7d   :  { %v34_v5 = vpop.permute.xlu0 %33 }
  0x7e   :  { %vm39_vm2 = vcmp.eq.s32.totalorder %v34_v5, %v190_v4 }
  0x7f   :  { %v40_v6 = vsel %vm39_vm2, 1.0, %v220_v3 }
  0x80   :  { %v42_v7 = vsel %vm41_vm1, %v40_v6, -inf }
  0x81   :  { %43 = vmax.xlane.f32.xlu0 %v42_v7 }
 0x10a   :  { %v44_v8 = vpop.xlane.xlu0 %43 }
 0x10b   :  { %v45_v9 = vrot.slane %v44_v8, 4 }
 0x10d   :  { %v46_v10 = vmax.f32 %v44_v8, %v45_v9 }
 0x10f   :  { %v47_v11 = vrot.slane %v46_v10, 2 }
 0x111   :  { %v48_v12 = vmax.f32 %v46_v10, %v47_v11 }
 0x113   :  { %v49_v13 = vrot.slane %v48_v12, 1 }
 0x115   :  { %v50_v14 = vmax.f32 %v48_v12, %v49_v13 }
 0x117   :  { %201 = vpush %v50_v14 }
 0x148   :  { %s202_s4 = spop %201 }
 0x149   :  { %p52_p0 = scmp.gt.f32.partialorder %s202_s4, 0.0 }
 0x14a   :  { %v57_v15 = vld [vmem:[%s293_s1] sm:$0xff] (%p52_p0)  ;;  %vm58_vm3 = vcmask (%p52_p0), 261120   ;;  %v221_v16 = vmov (%p52_p0), 0.0   ;;  %vm222_vm4 = vmmov (%p52_p0), 0   ;;  %v223_v19 = vmov (%p52_p0), 0   ;;  %v159_v39 = vld [vmem:[#allocation3] sm:$0xff] (%p52_p0) }
 0x14b   :  { %55 = sbr.rel (!%p52_p0) target bundleno = 958 (0x3be), region = 33  ;;  %196 = vmatprep.subr.mxu0 (%p52_p0), %v221_v16  ;;  %198 = vmatprep.mubr.msk.f32.mxu0 (%p52_p0), %vm222_vm4, %v221_v16  ;;  %v135_v17 = vld [vmem:[%s294_s2] sm:$0xff] (%p52_p0) }
 0x14c   :  { %197 = vmatpush3.xpose.msk.msra.mxu0 (%p52_p0), %vm58_vm3, %v57_v15  ;;  %v56_v18 = vld [vmem:[%s292_s0] sm:$0xff] (%p52_p0)  ;;  %210 = vset.pattern.permute.xlu0 (%p52_p0), %v223_v19 }
 0x14d   :  { %138 = vperm.xlu0 (%p52_p0), %210, %v135_v17   ;;  %211 = vset.pattern.permute.xlu1 (%p52_p0), %v223_v19  ;;  %v193_v22 = vld [vmem:[%s295_s3] ss:$0 sm:$0xff] (%p52_p0) }
 0x14e   :  { %v151_v28 = vld [vmem:[#allocation2] sm:$0xff] (%p52_p0) }
 0x14f   :  { %199 = vmatmul.mubr.msk.f32.vlgmr.msra.gmra.mxu0 (%p52_p0), %vm58_vm3, %v56_v18 }
 0x1c8   :  { %v139_v20 = vpop.permute.xlu0 %138 }
 0x20f   :  { %v131_v21 = vpop.f32.mrf.mxu0 }
 0x210   :  { %v141_v23 = vmul.f32 %v139_v20, %v131_v21 }
 0x211   :  { %v200_v24 = vpop.f32.mrf.mxu0 }
 0x212   :  { %v149_v25 = vmul.f32 %v193_v22, %v141_v23 }
 0x214   :  { %v150_v26 = vsel %vm39_vm2, %v149_v25, -inf }
 0x215   :  { %v152_v27 = vsel %vm41_vm1, %v150_v26, -inf }
 0x216   :  { %153 = vmax.xlane.f32.xlu0 %v152_v27 }
 0x29f   :  { %v154_v29 = vpop.xlane.xlu0 %153 }
 0x2a0   :  { %v155_v30 = vmax.f32 %v151_v28, %v154_v29 }
 0x2a2   :  { %v156_v31 = vsub.f32 %v151_v28, %v155_v30  ;;  %175 = vst.msk [vmem:[#allocation2] sm:$0xff] %vm27_vm0, %v155_v30  ;;  %163 = vperm.xlu1 %211, %v155_v30  }
 0x2a4   :  { %v157_v37 = vmul.f32 1.442695, %v156_v31 }
 0x31d   :  { %v164_v32 = vpop.permute.xlu1 %163 }
 0x31e   :  { %v166_v33 = vsub.f32 %v150_v26, %v164_v32 }
 0x320   :  { %v167_v34 = vmul.f32 1.442695, %v166_v33 }
 0x322   :  { %212 = vpow2.f32 %v167_v34 }
 0x323   :  { %214 = vpow2.f32 %v157_v37 }
 0x32f   :  { %v213_v35 = vpop.eup %212 }
 0x330   :  { %v169_v36 = vsel %vm41_vm1, %v213_v35, 0.0  ;;  %v215_v38 = vpop.eup %214 }
 0x331   :  { %170 = vadd.xlane.f32.xlu1 %v169_v36  ;;  %v160_v40 = vmul.f32 %v215_v38, %v159_v39 }
 0x3ba   :  { %v171_v41 = vpop.xlane.xlu1 %170 }
 0x3bb   :  { %v172_v42 = vadd.f32 %v171_v41, %v160_v40 }
 0x3bd   :  { %174 = vst.msk [vmem:[#allocation3] sm:$0xff] %vm27_vm0, %v172_v42 }
 0x3be PF:  { %v179_v45 = vld [vmem:[#allocation2] sm:$0xff] }
 0x3c4   :  { %v180_v43 = vld [vmem:[#allocation3] sm:$0xff] }
 0x3c5   :  { %216 = vlog2.f32 %v180_v43 }
 0x3d2   :  { %v217_v44 = vpop.eup %216 }
 0x3d3   :  { %v182_v46 = vmul.f32 0.6931472, %v217_v44 }
 0x3d5   :  { %v183_v47 = vadd.f32 %v182_v46, %v179_v45 }
 0x3d7   :  { %185 = vst.msk [vmem:[%s296_s6] sm:$0xff] %vm27_vm0, %v183_v47 }

</bundles_post_ra>
